<compile_context>
chip_gen: v7x
topology: tpu7x:2x2x1
jax: 0.10.0
libtpu: 0.0.40
codegen_flags: <defaults>
</compile_context>

<pallas_src>
import functools

import numpy as np
import jax
import jax.numpy as jnp
from jax.experimental import pallas as pl
from jax.experimental.pallas import tpu as pltpu


# ---------------------------------------------------------------------------
# hardware-aware budgeting helpers
# ---------------------------------------------------------------------------
@functools.lru_cache(maxsize=None)
def _vmem_cap_bytes():
    try:
        info = pltpu.get_tpu_info()
        cap = int(getattr(info, "vmem_capacity_bytes"))
        if cap > 0:
            return cap
    except Exception:
        pass
    return 128 << 20  # conservative fallback (v5e/v6e class)


def _is_small_vmem():
    return _vmem_cap_bytes() <= (64 << 20)  # v7x-class part


def _mosaic_params(semantics, est_bytes):
    # Generation-aware scoped-VMEM ceiling: ~48 MiB on 64 MiB parts (v7x), up to
    # ~100 MiB on 128 MiB parts (v5e/v6e). est_bytes is an *honest* estimate
    # (double-buffered DMA blocks + in-kernel temporaries), so only a 1.5x margin.
    cap = _vmem_cap_bytes()
    ceiling = (48 << 20) if _is_small_vmem() else min(cap - (28 << 20), 100 << 20)
    vmem = int(min(ceiling, max(int(1.5 * est_bytes), 24 << 20)))
    return pltpu.CompilerParams(dimension_semantics=semantics,
                                vmem_limit_bytes=vmem)


def _row_tile(m, cap=512, min_steps=4):
    """Largest multiple-of-8 divisor of m that is <= cap, preferring >=min_steps
    grid steps (keeps both v7x TensorCores busy and leaves pipelining room)."""
    divs = [d for d in range(8, min(m, cap) + 1, 8) if m % d == 0]
    if not divs:
        return m  # full dim is always a legal block shape
    pref = [d for d in divs if m // d >= min_steps]
    return max(pref) if pref else max(divs)


def _k_tile(cin, cap=512):
    if cin <= cap:
        return cin
    t = (cap // 128) * 128
    while t >= 128:
        if cin % t == 0:
            return t
        t -= 128
    return cin


def _col_tile(cout, cap=2048):
    """Optionally tile very wide output dims (fc1 / up_w at real nnFormer dims) so
    the (cin, cout) weight block fits the smaller v7x VMEM without shrinking tm."""
    limit = 1024 if _is_small_vmem() else 2048
    limit = min(limit, cap)
    if cout <= limit:
        return cout
    t = (limit // 128) * 128
    while t >= 128:
        if cout % t == 0:
            return t
        t -= 128
    return cout


def _attn_window_budget():
    # bytes of per-window working set allowed per grid step (incl. f32 temporaries)
    return (5 << 20) if _is_small_vmem() else (12 << 20)


def _pick_wb(n_win, nwb, bytes_per_window, budget, cap=64, min_steps=4):
    """Largest windows-per-step wb that divides n_win, fits the budget and (if
    possible) leaves >= min_steps grid steps over the nwb total windows."""
    for need in (min_steps, 1):
        best = 0
        for wb in range(1, min(n_win, cap) + 1):
            if (n_win % wb == 0 and wb * bytes_per_window <= budget
                    and (nwb // wb) >= need):
                best = wb
        if best:
            return best
    return 1


# ---------------------------------------------------------------------------
# Pallas kernels
# ---------------------------------------------------------------------------
def _ln_linear_kernel(x_ref, g_ref, b_ref, w_ref, bias_ref, o_ref, *, apply_gelu):
    """Fused LayerNorm (over last dim) + Linear (+ optional exact erf-GELU)."""
    x = x_ref[...].astype(jnp.float32)
    mean = jnp.mean(x, axis=-1, keepdims=True)
    var = jnp.mean(jnp.square(x - mean), axis=-1, keepdims=True)
    xn = (x - mean) * jax.lax.rsqrt(var + 1e-5)
    xn = xn * g_ref[...] + b_ref[...]
    y = jnp.dot(xn.astype(jnp.bfloat16), w_ref[...],
                preferred_element_type=jnp.float32) + bias_ref[...]
    if apply_gelu:
        # exact erf-GELU to match torch.nn.GELU
        y = 0.5 * y * (1.0 + jax.lax.erf(y * (1.0 / np.sqrt(2.0))))
    o_ref[...] = y.astype(o_ref.dtype)


def _linear_kernel(x_ref, w_ref, bias_ref, o_ref, acc_ref, *, apply_gelu):
    """Linear with K-reduction grid axis and f32 VMEM accumulator (P3 pattern)."""
    @pl.when(pl.program_id(1) == 0)
    def _():
        acc_ref[...] = jnp.zeros_like(acc_ref)

    acc_ref[...] += jnp.dot(x_ref[...].astype(jnp.bfloat16), w_ref[...],
                            preferred_element_type=jnp.float32)

    @pl.when(pl.program_id(1) == pl.num_programs(1) - 1)
    def _():
        y = acc_ref[...] + bias_ref[...]
        if apply_gelu:
            y = 0.5 * y * (1.0 + jax.lax.erf(y * (1.0 / np.sqrt(2.0))))
        o_ref[...] = y.astype(o_ref.dtype)


def _window_attn_kernel(*refs, num_heads, apply_mask):
    """Batched-window attention core: scores + rel-bias (+ mask) + softmax + attn@v.

    QKV / output projections run outside as large matmuls.  The qk scale is already
    folded into the QKV weights, so q/k/v stay bf16 here; only softmax stats are f32.
    """
    if apply_mask:
        qkv_ref, bias_ref, mask_ref, o_ref = refs
    else:
        qkv_ref, bias_ref, o_ref = refs
        mask_ref = None

    qkv = qkv_ref[...].astype(jnp.bfloat16)              # (Wb, N, 3C) bf16
    wb, n, c3 = qkv.shape
    c = c3 // 3
    hd = c // num_heads

    q = qkv[:, :, 0 * c:1 * c]                            # scale pre-folded into W_q
    k = qkv[:, :, 1 * c:2 * c]
    v = qkv[:, :, 2 * c:3 * c]

    def split_heads(t):                                   # (Wb,N,C) -> (Wb*H, N, hd), bf16
        t = t.reshape(wb, n, num_heads, hd)
        t = jnp.transpose(t, (0, 2, 1, 3))
        return t.reshape(wb * num_heads, n, hd)

    qh = split_heads(q)
    kh = split_heads(k)
    vh = split_heads(v)

    # scores: one batched dot_general over (windows*heads), f32 accumulation
    scores = jax.lax.dot_general(qh, kh, (((2,), (2,)), ((0,), (0,))),
                                 preferred_element_type=jnp.float32)   # (Wb*H, N, N)
    scores = scores.reshape(wb, num_heads, n, n) + bias_ref[...][None]
    if apply_mask:
        scores = scores + mask_ref[...][:, None, :, :]

    scores = scores - jnp.max(scores, axis=-1, keepdims=True)
    e = jnp.exp(scores)
    p = e * pl.reciprocal(jnp.sum(e, axis=-1, keepdims=True), approx=True)
    p = p.reshape(wb * num_heads, n, n).astype(jnp.bfloat16)

    out = jax.lax.dot_general(p, vh, (((2,), (1,)), ((0,), (0,))),
                              preferred_element_type=jnp.float32)      # (Wb*H, N, hd)
    out = out.reshape(wb, num_heads, n, hd)
    # TODO(synk): fold this head-merge + the downstream proj into a grouped matmul to
    #             drop the last in-kernel transpose; kept explicit for correctness.
    out = jnp.transpose(out, (0, 2, 1, 3)).reshape(wb, n, c)
    o_ref[...] = out.astype(o_ref.dtype)


# ---------------------------------------------------------------------------
# Pallas wrappers
# ---------------------------------------------------------------------------
def ln_linear(x2d, gamma, beta, w, bias, gelu=False, out_dtype=jnp.bfloat16):
    m, cin = x2d.shape
    cout = w.shape[1]
    tm = _row_tile(m)
    tn = _col_tile(cout)
    xb = jnp.dtype(x2d.dtype).itemsize
    ob = jnp.dtype(out_dtype).itemsize
    est = (2 * tm * cin * xb            # x block (double buffered)
           + 2 * cin * tn * 2           # bf16 weight block
           + 2 * tm * tn * ob           # output block
           + 2 * (2 * cin + tn) * 4     # gamma/beta/bias
           + 2 * tm * cin * 4           # x / xn f32 temporaries
           + tm * tn * 4)               # y f32 temporary
    kern = functools.partial(_ln_linear_kernel, apply_gelu=gelu)
    return pl.pallas_call(
        kern,
        out_shape=jax.ShapeDtypeStruct((m, cout), out_dtype),
        grid=(m // tm, cout // tn),
        in_specs=[pl.BlockSpec((tm, cin), lambda i, j: (i, 0)),
                  pl.BlockSpec((1, cin), lambda i, j: (0, 0)),
                  pl.BlockSpec((1, cin), lambda i, j: (0, 0)),
                  pl.BlockSpec((cin, tn), lambda i, j: (0, j)),
                  pl.BlockSpec((1, tn), lambda i, j: (0, j))],
        out_specs=pl.BlockSpec((tm, tn), lambda i, j: (i, j)),
        compiler_params=_mosaic_params(("parallel", "parallel"), est),
    )(x2d,
      gamma.reshape(1, -1).astype(jnp.float32),
      beta.reshape(1, -1).astype(jnp.float32),
      w.astype(jnp.bfloat16),
      bias.reshape(1, -1).astype(jnp.float32))


def linear(x2d, w, bias, gelu=False, out_dtype=jnp.bfloat16):
    m, cin = x2d.shape
    cout = w.shape[1]
    tm = _row_tile(m)
    tk = _k_tile(cin)
    xb = jnp.dtype(x2d.dtype).itemsize
    ob = jnp.dtype(out_dtype).itemsize
    est = (2 * tm * tk * xb + 2 * tk * cout * 2 + 2 * tm * cout * ob
           + tm * cout * 4               # acc scratch
           + tm * cout * 4               # y f32 temporary
           + 2 * cout * 4)
    kern = functools.partial(_linear_kernel, apply_gelu=gelu)
    # TODO(synk): sweep pipeline_mode=pl.Buffered(3) on the weight BlockSpec once the
    #             shapes are compute-starved at real fc2/proj dims.
    return pl.pallas_call(
        kern,
        out_shape=jax.ShapeDtypeStruct((m, cout), out_dtype),
        grid=(m // tm, cin // tk),
        in_specs=[pl.BlockSpec((tm, tk), lambda i, k: (i, k)),
                  pl.BlockSpec((tk, cout), lambda i, k: (k, 0)),
                  pl.BlockSpec((1, cout), lambda i, k: (0, 0))],
        out_specs=pl.BlockSpec((tm, cout), lambda i, k: (i, 0)),
        scratch_shapes=[pltpu.VMEM((tm, cout), jnp.float32)],
        compiler_params=_mosaic_params(("parallel", "arbitrary"), est),
    )(x2d, w.astype(jnp.bfloat16), bias.reshape(1, -1).astype(jnp.float32))


def window_attention(qkv_w, rel_bias, mask, num_heads):
    nwb, n, c3 = qkv_w.shape
    c = c3 // 3
    n_win = mask.shape[0] if mask is not None else nwb
    in_b = jnp.dtype(qkv_w.dtype).itemsize

    # honest per-window working set: DMA'd blocks x2 (double buffer) + f32 temporaries
    per_win = (2 * n * c3 * in_b              # qkv block
               + 2 * n * c * in_b             # output block
               + 3 * n * c * 2                # qh/kh/vh bf16
               + 3 * num_heads * n * n * 4    # scores / e / p f32
               + num_heads * n * n * 2        # p bf16
               + n * c * 4)                   # attn@v f32
    if mask is not None:
        per_win += 2 * n * n * 4
    wb = _pick_wb(n_win, nwb, per_win, _attn_window_budget())
    nblk = (n_win // wb) if mask is not None else 1
    est = wb * per_win + 2 * num_heads * n * n * 4   # + invariant rel-bias block

    kern = functools.partial(_window_attn_kernel, num_heads=num_heads,
                             apply_mask=mask is not None)
    in_specs = [pl.BlockSpec((wb, n, c3), lambda i: (i, 0, 0)),
                pl.BlockSpec((num_heads, n, n), lambda i: (0, 0, 0))]
    args = [qkv_w, rel_bias]
    if mask is not None:
        # per-image mask, reused across the batch via index_map (no B-times tiling)
        in_specs.append(pl.BlockSpec((wb, n, n), lambda i: (i % nblk, 0, 0)))
        args.append(mask)

    # TODO(synk): when C < 128, flatten (N, C) into the last block dim for lane-dense
    #             stores, and use a VPU path for the tiny N=8 score/attn@v matmuls.
    return pl.pallas_call(
        kern,
        out_shape=jax.ShapeDtypeStruct((nwb, n, c), qkv_w.dtype),
        grid=(nwb // wb,),
        in_specs=in_specs,
        out_specs=pl.BlockSpec((wb, n, c), lambda i: (i, 0, 0)),
        compiler_params=_mosaic_params(("parallel",), est),
    )(*args)


# ---------------------------------------------------------------------------
# JAX / numpy glue faithfully mirroring the PyTorch module
# ---------------------------------------------------------------------------
def window_partition(x, ws):
    B, S, H, W, C = x.shape
    x = x.reshape(B, S // ws[0], ws[0], H // ws[1], ws[1], W // ws[2], ws[2], C)
    return jnp.transpose(x, (0, 1, 3, 5, 2, 4, 6, 7)).reshape(-1, ws[0], ws[1], ws[2], C)


def window_reverse(windows, ws, H, W, L):
    # Faithful to the reference (same permute as the forward partition, then a flat
    # view to (B, H, W, -1)); intentionally NOT the mathematical inverse permutation.
    B = windows.shape[0] // (H * W * L // (ws[0] * ws[1] * ws[2]))
    x = windows.reshape(B, H // ws[0], W // ws[1], L // ws[2], ws[0], ws[1], ws[2], -1)
    return jnp.transpose(x, (0, 1, 3, 5, 2, 4, 6, 7)).reshape(B, H, W, -1)


def make_rel_index(ws):
    # Faithful to the reference's multipliers (3*ws[1]-1 and 2*ws[1]-1).
    coords = np.stack(np.meshgrid(np.arange(ws[0]), np.arange(ws[1]),
                                  np.arange(ws[2]), indexing="ij"))
    cf = coords.reshape(3, -1)
    rc = (cf[:, :, None] - cf[:, None, :]).transpose(1, 2, 0).astype(np.int64)
    rc[:, :, 0] += ws[0] - 1
    rc[:, :, 1] += ws[1] - 1
    rc[:, :, 2] += ws[2] - 1
    rc[:, :, 0] *= 3 * ws[1] - 1
    rc[:, :, 1] *= 2 * ws[1] - 1
    return jnp.asarray(rc.sum(-1), dtype=jnp.int32)


def _np_window_partition(x, ws):
    B, S, H, W, C = x.shape
    x = x.reshape(B, S // ws[0], ws[0], H // ws[1], ws[1], W // ws[2], ws[2], C)
    return x.transpose(0, 1, 3, 5, 2, 4, 6, 7).reshape(-1, ws[0], ws[1], ws[2], C)


def build_attn_mask(Sp, Hp, Wp, ws, ss):
    img_mask = np.zeros((1, Sp, Hp, Wp, 1), np.float32)
    s_slices = (slice(0, -ws[0]), slice(-ws[0], -ss[0]), slice(-ss[0], None))
    h_slices = (slice(0, -ws[1]), slice(-ws[1], -ss[1]), slice(-ss[1], None))
    w_slices = (slice(0, -ws[2]), slice(-ws[2], -ss[2]), slice(-ss[2], None))
    cnt = 0
    for s in s_slices:
        for h in h_slices:
            for w in w_slices:
                img_mask[:, s, h, w, :] = cnt
                cnt += 1
    mw = _np_window_partition(img_mask, ws).reshape(-1, ws[0] * ws[1] * ws[2])
    am = mw[:, None, :] - mw[:, :, None]
    am = np.where(am != 0, -100.0, 0.0).astype(np.float32)
    return jnp.asarray(am)                              # (nW, N, N)


def _fold_qk_scale(p, dim, num_heads):
    """Fold the qk scale into the Q columns of wqkv / bqkv (param-prep time)."""
    scale = float(dim // num_heads) ** (-0.5)
    wqkv = p["wqkv"].astype(jnp.float32).at[:, :dim].multiply(scale)
    bqkv = p["bqkv"].astype(jnp.float32).at[:dim].multiply(scale)
    q = dict(p)
    q["wqkv"] = wqkv.astype(jnp.bfloat16)
    q["bqkv"] = bqkv
    return q


def swin_block(x, p, B, S, H, W, ws, shift, attn_mask, rel_index, num_heads):
    C = x.shape[-1]
    L = S * H * W
    N = ws[0] * ws[1] * ws[2]
    shifted = min(shift) > 0
    shortcut = x                                         # f32 residual stream

    # fused norm1 + QKV over all tokens (position-wise; commutes with roll/partition).
    # qk scale already folded into the weights; output carried bf16.
    qkv = ln_linear(x.reshape(-1, C), p["norm1_g"], p["norm1_b"],
                    p["wqkv"], p["bqkv"])                # (B*L, 3C) bf16
    qkv = qkv.reshape(B, S, H, W, 3 * C)
    # TODO(synk): express roll + window partition via the QKV out_spec index_map to
    #             remove this XLA relayout round-trip (and its inverse below).
    if shifted:
        qkv = jnp.roll(qkv, shift=(-shift[0], -shift[1], -shift[2]), axis=(1, 2, 3))
    qkv_w = window_partition(qkv, ws).reshape(-1, N, 3 * C)

    rel_bias = p["rel_table"][rel_index.reshape(-1)].reshape(N, N, num_heads)
    rel_bias = jnp.transpose(rel_bias, (2, 0, 1)).astype(jnp.float32)

    attn = window_attention(qkv_w, rel_bias, attn_mask if shifted else None,
                            num_heads)                   # (NW*B, N, C) bf16

    # output projection hoisted out of the attention kernel (still before
    # window_reverse, matching the reference op order)
    attn = linear(attn.reshape(-1, C), p["wproj"], p["bproj"])
    attn_win = attn.reshape(-1, ws[0], ws[1], ws[2], C)

    xr = window_reverse(attn_win, ws, S, H, W)           # (B, S, H, W*C) as in reference
    if shifted:
        xr = jnp.roll(xr, shift=(shift[0], shift[1], shift[2]), axis=(1, 2, 3))
    x = shortcut + xr.reshape(B, L, C)                    # f32 residual add

    # fused norm2 + fc1 + GELU, then fc2 (both bf16 activations)
    h1 = ln_linear(x.reshape(-1, C), p["norm2_g"], p["norm2_b"],
                   p["fc1_w"], p["fc1_b"], gelu=True)
    h2 = linear(h1, p["fc2_w"], p["fc2_b"])
    return x + h2.reshape(B, L, C)


def basic_layer_up(x, skip, S, H, W, params, window_size, num_heads, depth):
    B, L, Cin = x.shape
    dim = Cin // 2

    # ---- Patch_Expanding: LayerNorm + ConvTranspose3d(2*dim->dim, k=2, s=2) ----
    # channels-last: fused LN + matmul with weight reshaped (Cin, dim*8), then a
    # pixel-shuffle reshape (on bf16 data -> half the HBM traffic of the glue).
    # TODO(synk): the pixel-shuffle could be expressed via the output BlockSpec
    #             index_map to avoid the XLA transpose round-trip.
    b8 = jnp.repeat(params["up_b"], 8)                   # per-(co,offset) bias
    y = ln_linear(x.reshape(-1, Cin), params["up_norm_g"], params["up_norm_b"],
                  params["up_w"], b8, gelu=False)        # (B*S*H*W, dim*8) bf16
    y = y.reshape(B, S, H, W, dim, 2, 2, 2)
    y = jnp.transpose(y, (0, 1, 5, 2, 6, 3, 7, 4)).reshape(B, 2 * S, 2 * H, 2 * W, dim)
    x_up = y.reshape(B, 8 * S * H * W, dim) + skip       # f32 residual stream

    S, H, W = 2 * S, 2 * H, 2 * W
    ws = window_size
    ss = (ws[0] // 2, ws[1] // 2, ws[2] // 2)
    Sp = int(np.ceil(S / ws[0])) * ws[0]
    Hp = int(np.ceil(H / ws[1])) * ws[1]
    Wp = int(np.ceil(W / ws[2])) * ws[2]
    # TODO(synk): padded path (S,H,W not multiples of window) not implemented; the
    # reference code itself would fail there (5-index slice on a 4-D tensor).
    assert (Sp, Hp, Wp) == (S, H, W), "padded window path not supported"

    attn_mask = build_attn_mask(Sp, Hp, Wp, ws, ss)      # (nW, N, N), built host-side
    rel_index = make_rel_index(ws)

    blocks = [_fold_qk_scale(b, dim, num_heads) for b in params["blocks"]]
    for i in range(depth):
        shift = (0, 0, 0) if i % 2 == 0 else ss
        x_up = swin_block(x_up, blocks[i], B, S, H, W, ws, shift,
                          attn_mask, rel_index, num_heads)
    return x_up, S, H, W


# ---------------------------------------------------------------------------
# Deterministic parameter initialization
# ---------------------------------------------------------------------------
def init_params(key, dim, num_heads, depth, window_size, mlp_ratio=4.0):
    ws = window_size
    hidden = int(dim * mlp_ratio)
    kiter = iter(jax.random.split(key, 64))

    def w(shape, std=0.02, dtype=jnp.float32):
        return (std * jax.random.normal(next(kiter), shape)).astype(dtype)

    # matmul weights stored bf16 (MXU inputs); norms / biases / tables stay f32
    params = {
        "up_norm_g": jnp.ones((2 * dim,), jnp.float32),
        "up_norm_b": jnp.zeros((2 * dim,), jnp.float32),
        "up_w": w((2 * dim, dim * 8), dtype=jnp.bfloat16),   # ConvTranspose3d -> (Cin, Cout*8)
        "up_b": w((dim,)),
        "blocks": [],
    }
    num_rel = (2 * ws[0] - 1) * (2 * ws[1] - 1) * (2 * ws[2] - 1)
    for _ in range(depth):
        params["blocks"].append({
            "norm1_g": jnp.ones((dim,), jnp.float32),
            "norm1_b": jnp.zeros((dim,), jnp.float32),
            "wqkv": w((dim, 3 * dim), dtype=jnp.bfloat16),
            "bqkv": w((3 * dim,)),
            "rel_table": w((num_rel, num_heads)),
            "wproj": w((dim, dim), dtype=jnp.bfloat16),
            "bproj": w((dim,)),
            "norm2_g": jnp.ones((dim,), jnp.float32),
            "norm2_b": jnp.zeros((dim,), jnp.float32),
            "fc1_w": w((dim, hidden), dtype=jnp.bfloat16),
            "fc1_b": w((hidden,)),
            "fc2_w": w((hidden, dim), dtype=jnp.bfloat16),
            "fc2_b": w((dim,)),
        })
    return params


# ---------------------------------------------------------------------------
if __name__ == "__main__":
    key = jax.random.PRNGKey(0)
    dim, num_heads, depth = 16, 2, 2
    window_size = (2, 2, 2)
    B, S, H, W = 2, 4, 4, 4                     # low-res grid entering the up-layer

    k1, k2, k3 = jax.random.split(key, 3)
    x = jax.random.normal(k1, (B, S * H * W, 2 * dim), jnp.float32)      # (2, 64, 32)
    skip = jax.random.normal(k2, (B, 8 * S * H * W, dim), jnp.float32)   # (2, 512, 16)
    params = init_params(k3, dim, num_heads, depth, window_size)

    out, S2, H2, W2 = basic_layer_up(x, skip, S, H, W, params,
                                     window_size, num_heads, depth)
    jax.block_until_ready(out)
    assert out.shape == (B, S2 * H2 * W2, dim)
    assert bool(jnp.all(jnp.isfinite(out)))
    print("KERNEL_OK")
</pallas_src>

<mosaic_0001>
module attributes {stable_mosaic.version = 11 : i64} {
  func.func @_ln_linear_kernel(%arg0: i32, %arg1: i32, %arg2: memref<32x32xf32, #tpu.memory_space<vmem>>, %arg3: memref<1x32xf32, #tpu.memory_space<vmem>>, %arg4: memref<1x32xf32, #tpu.memory_space<vmem>>, %arg5: memref<32x128xbf16, #tpu.memory_space<vmem>>, %arg6: memref<1x128xf32, #tpu.memory_space<vmem>>, %arg7: memref<32x128xbf16, #tpu.memory_space<vmem>>) attributes {dimension_semantics = [#tpu.dimension_semantics<parallel>, #tpu.dimension_semantics<parallel>], iteration_bounds = array<i64: 4, 1>, scalar_prefetch = 0 : i64, scratch_operands = 0 : i64, tpu.core_type = #tpu.core_type<tc>, window_params = [{transform_indices = @transform_0, window_bounds = array<i64: 32, 32>}, {pipeline_mode = #tpu.pipeline_mode<synchronous>, transform_indices = @transform_1, window_bounds = array<i64: 1, 32>}, {pipeline_mode = #tpu.pipeline_mode<synchronous>, transform_indices = @transform_2, window_bounds = array<i64: 1, 32>}, {transform_indices = @transform_3, window_bounds = array<i64: 32, 128>}, {transform_indices = @transform_4, window_bounds = array<i64: 1, 128>}, {transform_indices = @transform_5, window_bounds = array<i64: 32, 128>}]} {
    %c0 = arith.constant 0 : index
    %c0_0 = arith.constant 0 : index
    %0 = vector.load %arg2[%c0, %c0_0] : memref<32x32xf32, #tpu.memory_space<vmem>>, vector<32x32xf32>
    %cst = arith.constant dense<0.000000e+00> : vector<32xf32>
    %1 = vector.multi_reduction <add>, %0, %cst [1] : vector<32x32xf32> to vector<32xf32>
    %2 = vector.shape_cast %1 : vector<32xf32> to vector<32x1xf32>
    %cst_1 = arith.constant 3.200000e+01 : f32
    %3 = vector.broadcast %cst_1 : f32 to vector<32x1xf32>
    %4 = arith.divf %2, %3 : vector<32x1xf32>
    %5 = vector.broadcast %4 : vector<32x1xf32> to vector<32x32xf32>
    %6 = arith.subf %0, %5 : vector<32x32xf32>
    %7 = arith.mulf %6, %6 : vector<32x32xf32>
    %cst_2 = arith.constant dense<0.000000e+00> : vector<32xf32>
    %8 = vector.multi_reduction <add>, %7, %cst_2 [1] : vector<32x32xf32> to vector<32xf32>
    %9 = vector.shape_cast %8 : vector<32xf32> to vector<32x1xf32>
    %cst_3 = arith.constant 3.200000e+01 : f32
    %10 = vector.broadcast %cst_3 : f32 to vector<32x1xf32>
    %11 = arith.divf %9, %10 : vector<32x1xf32>
    %12 = vector.broadcast %4 : vector<32x1xf32> to vector<32x32xf32>
    %13 = arith.subf %0, %12 : vector<32x32xf32>
    %cst_4 = arith.constant 9.99999974E-6 : f32
    %14 = vector.broadcast %cst_4 : f32 to vector<32x1xf32>
    %15 = arith.addf %11, %14 : vector<32x1xf32>
    %16 = math.rsqrt %15 : vector<32x1xf32>
    %17 = vector.broadcast %16 : vector<32x1xf32> to vector<32x32xf32>
    %18 = arith.mulf %13, %17 : vector<32x32xf32>
    %c0_5 = arith.constant 0 : index
    %c0_6 = arith.constant 0 : index
    %19 = vector.load %arg3[%c0_5, %c0_6] : memref<1x32xf32, #tpu.memory_space<vmem>>, vector<1x32xf32>
    %20 = vector.broadcast %19 : vector<1x32xf32> to vector<32x32xf32>
    %21 = arith.mulf %18, %20 : vector<32x32xf32>
    %c0_7 = arith.constant 0 : index
    %c0_8 = arith.constant 0 : index
    %22 = vector.load %arg4[%c0_7, %c0_8] : memref<1x32xf32, #tpu.memory_space<vmem>>, vector<1x32xf32>
    %23 = vector.broadcast %22 : vector<1x32xf32> to vector<32x32xf32>
    %24 = arith.addf %21, %23 : vector<32x32xf32>
    %25 = arith.truncf %24 : vector<32x32xf32> to vector<32x32xbf16>
    %c0_9 = arith.constant 0 : index
    %c0_10 = arith.constant 0 : index
    %26 = vector.load %arg5[%c0_9, %c0_10] : memref<32x128xbf16, #tpu.memory_space<vmem>>, vector<32x128xbf16>
    %cst_11 = arith.constant dense<0.000000e+00> : vector<32x128xf32>
    %27 = tpu.matmul %25, %26, %cst_11 {dimension_numbers = #tpu.dot_dimension_numbers<[1], [0], [0], [1], [0, 0, 1, 1], [], []>} : vector<32x32xbf16>, vector<32x128xbf16>, vector<32x128xf32> -> vector<32x128xf32>
    %c0_12 = arith.constant 0 : index
    %c0_13 = arith.constant 0 : index
    %28 = vector.load %arg6[%c0_12, %c0_13] : memref<1x128xf32, #tpu.memory_space<vmem>>, vector<1x128xf32>
    %29 = vector.broadcast %28 : vector<1x128xf32> to vector<32x128xf32>
    %30 = arith.addf %27, %29 : vector<32x128xf32>
    %31 = arith.truncf %30 : vector<32x128xf32> to vector<32x128xbf16>
    %c0_14 = arith.constant 0 : index
    %c0_15 = arith.constant 0 : index
    %32 = vector.load %arg7[%c0_14, %c0_15] : memref<32x128xbf16, #tpu.memory_space<vmem>>, vector<32x128xbf16>
    tpu.vector_store %arg7[%c0_14, %c0_15], %31 {strides = array<i32>} : memref<32x128xbf16, #tpu.memory_space<vmem>>, vector<32x128xbf16>,
    return
  }
  func.func @transform_0(%arg0: i32, %arg1: i32) -> (i32, i32) {
    %c0_i32 = arith.constant 0 : i32
    %c0_i32_0 = arith.constant 0 : i32
    return %arg0, %c0_i32 : i32, i32
  }
  func.func @transform_1(%arg0: i32, %arg1: i32) -> (i32, i32) {
    %c0_i32 = arith.constant 0 : i32
    %c0_i32_0 = arith.constant 0 : i32
    %c0_i32_1 = arith.constant 0 : i32
    return %c0_i32, %c0_i32_0 : i32, i32
  }
  func.func @transform_2(%arg0: i32, %arg1: i32) -> (i32, i32) {
    %c0_i32 = arith.constant 0 : i32
    %c0_i32_0 = arith.constant 0 : i32
    %c0_i32_1 = arith.constant 0 : i32
    return %c0_i32, %c0_i32_0 : i32, i32
  }
  func.func @transform_3(%arg0: i32, %arg1: i32) -> (i32, i32) {
    %c0_i32 = arith.constant 0 : i32
    %c0_i32_0 = arith.constant 0 : i32
    return %c0_i32, %arg1 : i32, i32
  }
  func.func @transform_4(%arg0: i32, %arg1: i32) -> (i32, i32) {
    %c0_i32 = arith.constant 0 : i32
    %c0_i32_0 = arith.constant 0 : i32
    return %c0_i32, %arg1 : i32, i32
  }
  func.func @transform_5(%arg0: i32, %arg1: i32) -> (i32, i32) {
    %c0_i32 = arith.constant 0 : i32
    return %arg0, %arg1 : i32, i32
  }
}

</mosaic_0001>

<bundles_post_ra>
// kernel: tpu_custom_call.1
= control target key start
LH: loop header
LB: loop body
LE: loop exit
PB: predicated region body
PF: predicated region fallthrough
CT: control target
= control target key end

     0   :  { %10 = vsyncpa [#allocation3], 0  ;;  %s939_s0 = inlined_call_operand.vmem [shape: f32[128,32], index: 0, kind: input, shape index: {}]   ;;  %s940_s1 = inlined_call_operand.vmem [shape: f32[1,32], index: 1, kind: input, shape index: {}]   ;;  %s941_s2 = inlined_call_operand.vmem [shape: f32[1,32], index: 2, kind: input, shape index: {}]   ;;  %s942_s3 = inlined_call_operand.vmem [shape: bf16[32,128], index: 3, kind: input, shape index: {}]   ;;  %s943_s4 = inlined_call_operand.vmem [shape: f32[1,128], index: 4, kind: input, shape index: {}]   ;;  %s944_s5 = inlined_call_operand.hbm [shape: bf16[128,128], index: 5, kind: output, shape index: {}]  }
   0x1   :  { %12 = vsyncpa [#allocation3 + $0x1], 0  ;;  %s800_s18 = smov 0   ;;  %s802_s19 = smov 0  }
   0x2   :  { %s804_s20 = smov 0   ;;  %s806_s21 = smov 0  }
   0x3   :  { %s808_s22 = smov 0   ;;  %s810_s23 = smov 0  }
   0x4 LB: > { %s566_s24 = sadd.s32 4294967295, %s765_s23   ;;  %s567_s25 = sadd.s32 4294967294, %s765_s23   ;;  %s765_s23 = sphi %s810_s23, %s18_s23   ;;  %s761_s22 = sphi %s808_s22, %s951_s22   ;;  %s757_s21 = sphi %s806_s21, %s950_s21   ;;  %s753_s20 = sphi %s804_s20, %s949_s20   ;;  %s749_s19 = sphi %s802_s19, %s948_s19   ;;  %s745_s18 = sphi %s800_s18, %s947_s18  }
   0x5   : > { %s30_s26 = sadd.s32 1, %s761_s22  ;;  %s159_s27 = sadd.s32 1, %s753_s20 }
   0x6   : > { %p32_p0 = scmp.ge.s32.totalorder %s30_s26, 4  ;;  %p169_p1 = scmp.ne.s32.totalorder %s753_s20, %s749_s19 }
   0x7   : > { %p170_p2 = scmp.eq.s32.totalorder %s566_s24, 3  ;;  %p175_p3 = scmp.ne.s32.totalorder %s749_s19, %s745_s18 }
   0x8   : > { %s953_s26 = smov (%p32_p0, %s30_s26), 0  ;;  %p176_p5 = scmp.eq.s32.totalorder %s567_s25, 3 }
   0x9   : > { %p840_p4 = por %p170_p2, %p169_p1  ;;  %s154_s29 = ssub.s32 %s761_s22, %s953_s26 }
   0xa   : > { %p572_p6 = scmp.ge.s32.totalorder %s765_s23, 1  ;;  %p157_p7 = scmp.eq.s32.totalorder %s154_s29, 0 }
   0xb   : > { %p847_p8 = por %p176_p5, %p175_p3  ;;  %p222_p9 = scmp.lt.s32.totalorder %s765_s23, 5 }
   0xc   : > { %s853_s6 = scalar_select %p157_p7, %s753_s20, %s159_s27  }
   0xd   : > { %p223_p10 = pnand %p572_p6, %p222_p9 }
   0xe   : > { %s574_s7 = sshll.u32 (!%p223_p10), %s757_s21, 2  ;;  %vm276_vm0 = vcmask (!%p223_p10), 261120   ;;  %v677_v28 = vld [vmem:[%s942_s3] sm:$0xff] (!%p223_p10)   ;;  %v678_v29 = vld [vmem:[%s942_s3 + $0x8] sm:$0xff] (!%p223_p10)   ;;  %s254_s27 = sand.u32 (!%p223_p10), 1, %s749_s19  }
   0xf   : > { %226 = sbr.rel (%p223_p10) target bundleno = 583 (0x247), region = 40  ;;  %p258_p11 = scmp.lt.s32.totalorder (!%p223_p10), %s574_s7, 15  ;;  %612 = vmatprep.subr.bf16.mxu0 (!%p223_p10), %v677_v28  ;;  %v576_v44 = vld [vmem:[%s940_s1] ss:$0 sm:$0xff] (!%p223_p10) }
  0x10   : > { %613 = vmatpush3.bf16.msra.mxu0 (!%p223_p10), %v677_v28  ;;  %v577_v50 = vld [vmem:[%s941_s2] ss:$0 sm:$0xff] (!%p223_p10)  ;;  %s573_s29 = sshll.u32 (!%p223_p10), %s254_s27, 4  ;;  %s767_s16 = smov (!%p223_p10), [#allocation2]  }
  0x11   : > { %614 = vmatprep.subr.bf16.mxu0 (!%p223_p10), %v678_v29  ;;  %v578_v63 = vld [vmem:[%s943_s4] ss:$0 sm:$0xff] (!%p223_p10)  ;;  %s256_s9 = scalar_lea.vmem (!%p223_p10), [#allocation2], %s573_s29  ;;  %s691_s17 = sshll.u32 (!%p223_p10), %s767_s16, 4  ;;  %s692_s17 = int_to_ptr.vmem [resolvable:$false] %s691_s17 }
  0x12   : > { %s467_s10 = sshll.u32 (!%p223_p10), %s256_s9, 4  ;;  %s693_s24 = scalar_lea.vmem (!%p223_p10), %s692_s17, 512  ;;  %s886_s10 = int_to_ptr.vmem [resolvable:$true] %s467_s10 }
  0x13   : > { %s687_s15 = scalar_lea.vmem (!%p223_p10), %s886_s10, 256  ;;  %p694_p1 = scmp.lt.s32.totalorder (!%p223_p10), %s886_s10, %s692_s17 }
  0x14   : > { %615 = vmatpush3.bf16.msra.mxu0 (!%p223_p10), %v678_v29  ;;  %p688_p12 = scmp.ne.s32.totalorder (!%p223_p10), %s886_s10, %s687_s15  ;;  %p695_p2 = scmp.lt.s32.totalorder (!%p223_p10), %s693_s24, %s687_s15 }
  0x16   : > { %s955_s7 = smov (!%p258_p11, %s574_s7), 15  ;;  %p689_p13 = pnand %p688_p12, %p840_p4 }
  0x17   : > { %s575_s8 = sshll.u32 %s955_s7, 3  ;;  %p696_p3 = por %p695_p2, %p694_p1 }
  0x18   : > { %s261_s11 = scalar_lea.vmem %s939_s0, %s575_s8  ;;  %p690_p0 = pneg %p689_p13 }
  0x19   : > { %v272_v0 = vld [vmem:[%s261_s11] sm:$0xff]  ;;  %v274_v1 = vld [vmem:[%s261_s11 + $0x10] sm:$0xff]  ;;  %v273_v2 = vld [vmem:[%s261_s11 + $0x8] sm:$0xff] }
  0x1a   : > { %v277_v3 = vsel %vm276_vm0, %v272_v0, 0.0  ;;  %v283_v4 = vsel %vm276_vm0, %v274_v1, 0.0  ;;  %v275_v5 = vld [vmem:[%s261_s11 + $0x18] sm:$0xff]  ;;  %v280_v6 = vsel %vm276_vm0, %v273_v2, 0.0  ;;  %s596_s11 = sshll.u32 %s757_s21, 8  ;;  %s893_s21 = scalar_lea.sflag [#allocation3], %s254_s27 }
  0x1b   : > { %278 = vadd.xlane.f32.xlu0 %v277_v3  ;;  %284 = vadd.xlane.f32.xlu1 %v283_v4  ;;  %v286_v7 = vsel %vm276_vm0, %v275_v5, 0.0  ;;  %s891_s14 = scalar_lea.hbm %s944_s5, %s596_s11  ;;  %p697_p5 = pnand %p696_p3, %p690_p0 }
  0x1f   : > { %281 = vadd.xlane.f32.xlu0 %v280_v6  ;;  %287 = vadd.xlane.f32.xlu1 %v286_v7 }
  0xa8   : > { %v279_v8 = vpop.xlane.xlu0 %278  ;;  %v285_v9 = vpop.xlane.xlu1 %284 }
  0xa9   : > { %v290_v10 = vmul.f32 0.03125, %v279_v8  ;;  %v292_v11 = vmul.f32 0.03125, %v285_v9 }
  0xab   : > { %v294_v12 = vsub.f32 %v272_v0, %v290_v10  ;;  %v296_v13 = vsub.f32 %v274_v1, %v292_v11 }
  0xac   : > { %v282_v14 = vpop.xlane.xlu0 %281  ;;  %v288_v15 = vpop.xlane.xlu1 %287 }
  0xad   : > { %v291_v16 = vmul.f32 0.03125, %v282_v14  ;;  %v293_v17 = vmul.f32 0.03125, %v288_v15  ;;  %v298_v18 = vmul.f32 %v294_v12, %v294_v12  ;;  %v300_v19 = vmul.f32 %v296_v13, %v296_v13 }
  0xaf   : > { %v295_v20 = vsub.f32 %v273_v2, %v291_v16  ;;  %v297_v21 = vsub.f32 %v275_v5, %v293_v17  ;;  %v302_v22 = vsel %vm276_vm0, %v298_v18, 0.0  ;;  %v308_v23 = vsel %vm276_vm0, %v300_v19, 0.0 }
  0xb0   : > { %303 = vadd.xlane.f32.xlu0 %v302_v22 }
  0xb1   : > { %v299_v24 = vmul.f32 %v295_v20, %v295_v20  ;;  %v301_v25 = vmul.f32 %v297_v21, %v297_v21 }
  0xb3   : > { %v305_v26 = vsel %vm276_vm0, %v299_v24, 0.0  ;;  %v311_v27 = vsel %vm276_vm0, %v301_v25, 0.0 }
  0xb4   : > { %309 = vadd.xlane.f32.xlu0 %v308_v23  ;;  %306 = vadd.xlane.f32.xlu1 %v305_v26 }
  0xb8   : > { %312 = vadd.xlane.f32.xlu1 %v311_v27 }
 0x13d   : > { %v304_v30 = vpop.xlane.xlu0 %303 }
 0x13e   : > { %v314_v31 = vmul.f32 0.03125, %v304_v30 }
 0x140   : > { %v318_v32 = vadd.f32 1e-05, %v314_v31 }
 0x141   : > { %v307_v33 = vpop.xlane.xlu1 %306  ;;  %v310_v34 = vpop.xlane.xlu0 %309 }
 0x142   : > { %679 = vrsqrt.f32 %v318_v32  ;;  %v315_v35 = vmul.f32 0.03125, %v307_v33  ;;  %v316_v36 = vmul.f32 0.03125, %v310_v34 }
 0x144   : > { %v319_v37 = vadd.f32 1e-05, %v315_v35  ;;  %v320_v38 = vadd.f32 1e-05, %v316_v36 }
 0x145   : > { %v313_v39 = vpop.xlane.xlu1 %312 }
 0x146   : > { %681 = vrsqrt.f32 %v319_v37  ;;  %v317_v40 = vmul.f32 0.03125, %v313_v39 }
 0x147   : > { %683 = vrsqrt.f32 %v320_v38 }
 0x148   : > { %v321_v41 = vadd.f32 1e-05, %v317_v40 }
 0x14a   : > { %685 = vrsqrt.f32 %v321_v41 }
 0x14c   : > { %v680_v42 = vpop.eup %679 }
 0x14d   : > { %v326_v43 = vmul.f32 %v680_v42, %v294_v12 }
 0x14f   : > { %v337_v48 = vmul.f32 %v576_v44, %v326_v43 }
 0x150   : > { %v682_v45 = vpop.eup %681 }
 0x151   : > { %v684_v46 = vpop.eup %683  ;;  %v327_v47 = vmul.f32 %v682_v45, %v295_v20  ;;  %v348_v54 = vadd.f32 %v577_v50, %v337_v48 }
 0x152   : > { %v328_v49 = vmul.f32 %v684_v46, %v296_v13 }
 0x153   : > { %v338_v51 = vmul.f32 %v576_v44, %v327_v47 }
 0x154   : > { %v686_v52 = vpop.eup %685  ;;  %v339_v56 = vmul.f32 %v576_v44, %v328_v49 }
 0x155   : > { %v329_v53 = vmul.f32 %v686_v52, %v297_v21  ;;  %v349_v55 = vadd.f32 %v577_v50, %v338_v51 }
 0x156   : > { %v350_v59 = vadd.f32 %v577_v50, %v339_v56 }
 0x157   : > { %v352_v57 = vpack.c.bf16 %v349_v55, %v348_v54  ;;  %v340_v58 = vmul.f32 %v576_v44, %v329_v53 }
 0x159   : > { %616 = vmatprep.mubr.msk.bf16.mxu0 %vm276_vm0, %v352_v57  ;;  %v351_v60 = vadd.f32 %v577_v50, %v340_v58 }
 0x15b   : > { %v353_v61 = vpack.c.bf16 %v351_v60, %v350_v59 }
 0x15d   : > { %617 = vmatmul.mubr.msk.bf16.vlgmr.msra.gmra.mrb[0].mxu0 %vm276_vm0, %v353_v61 }
 0x230   : > { %v618_v62 = vpop.f32.mrb[0].mxu0 }
 0x231   : > { %v417_v0 = vpop.f32.mrb[1].mxu0  ;;  %v426_v2 = vadd.f32 %v618_v62, %v578_v63 }
 0x232   : > { %v619_v1 = vpop.f32.mrb[2].mxu0  ;;  %v418_v5 = vadd.f32 %v578_v63, %v417_v0 }
 0x233   : > { %v429_v3 = vadd.f32 %v619_v1, %v578_v63  ;;  %v420_v4 = vpop.f32.mrb[3].mxu0 }
 0x234   : > { %v421_v6 = vadd.f32 %v578_v63, %v420_v4 }
 0x235   : > { %v605_v7 = vpack.c.bf16 %v429_v3, %v426_v2 }
 0x236   : > { %v600_v8 = vpack.c.bf16 %v421_v6, %v418_v5 }
 0x237   : > { %607 = vst [vmem:[%s256_s9 + $0x8] sm:$0xff] %v605_v7  }
 0x238   : > { %601 = vst [vmem:[%s256_s9] sm:$0xff] %v600_v8  }
 0x239   : > { %700 = shalt.err (!%p697_p5)
}
 0x23a   : > { %s701_s25 = scalar_lea.hbm %s891_s14, 256  ;;  %s705_s7 = scalar_lea.hbm %s944_s5, 1024 }
 0x23b   : > { %p702_p6 = scmp.ne.s32.totalorder %s891_s14, %s701_s25  ;;  %p706_p10 = scmp.lt.u32.totalorder %s891_s14, %s944_s5 }
 0x23c   : > { %p707_p11 = scmp.lt.u32.totalorder %s705_s7, %s701_s25  ;;  %p709_p13 = scmp.lt.u32.totalorder %s701_s25, %s891_s14 }
 0x23d   : > { %p703_p7 = pnand %p702_p6, %p840_p4 }
 0x23e   : > { %p708_p12 = por %p707_p11, %p706_p10 }
 0x23f   : > { %p704_p9 = pneg %p703_p7 }
 0x240   : > { %p710_p0 = por %p709_p13, %p708_p12 }
 0x242   : > { %p711_p1 = pnand %p710_p0, %p704_p9 }
 0x244   : > { %714 = shalt.err (!%p711_p1)
}
 0x245   : > { %s768_s11 = smov 64   ;;  %s769_s12 = smov 4  }
 0x246   : > { %620 = dma.vmem_to_hbm [thread:$0]  (%p840_p4), %s886_s10, 256, %s891_s14, %s893_s21, %s768_s11, %s768_s11, %s769_s12  }
 0x247 PF: > { %p626_p2 = scmp.ge.s32.totalorder %s765_s23, 2  ;;  %s482_s13 = sand.u32 1, %s745_s18  }
 0x248   : > { %s483_s15 = scalar_lea.sflag [#allocation3], %s482_s13 }
 0x249   : > { %p623_p3 = pnand %p626_p2, %p847_p8 }
 0x24b   : > { %740 = dma.done.wait (!%p623_p3), %s483_s15, 256  }
 0x24c   : > { %742 = vsyncadd (!%p623_p3), %s483_s15, 4294967040  ;;  %s18_s23 = sadd.s32 1, %s765_s23   ;;  %s947_s18 = smov %s749_s19 }
 0x24d   : > { %p15_p5 = scmp.ge.s32.totalorder %s18_s23, 6   ;;  %s948_s19 = smov %s753_s20 }
 0x24e   : > { %s949_s20 = smov %s853_s6  ;;  %s950_s21 = smov %s761_s22 }
 0x24f   : > { %s951_s22 = smov %s953_s26  ;;  %17 = sbr.rel (!%p15_p5) target bundleno = 4 (0x4), region = 81 }
 0x256   :  { %488 = vsyncpa [#allocation3], 1 }
 0x257   :  { %490 = vsyncpa [#allocation3 + $0x1], 1 }

</bundles_post_ra>
